<compile_context>
chip_gen: v6e
topology: v6e:2x2x1
jax: 0.10.0
libtpu: 0.0.40
codegen_flags: <defaults>
</compile_context>

<pallas_src>
import functools

import jax
import jax.numpy as jnp
from jax.experimental import pallas as pl
from jax.experimental.pallas import tpu as pltpu

TAU = 2.0
V_THRESHOLD = 1.0
IN_FEATURES = 28 * 28          # 784 (multiple of 8/16 sublanes; full-extent K block)
OUT_FEATURES = 10
N_PAD = 128                    # lane-dense output width (zero-padded weight cols)
TM_MAX = 2048                  # 2048*784*4B = 6.3 MiB f32 X tile; ~14 MiB double-buffered total
TM_MIN = 16                    # bf16 output packs 16 rows per sublane tile


def _round_up(x, m):
    return (x + m - 1) // m * m


def _pick_tm(n):
    if n <= TM_MIN:
        return TM_MIN
    # Aim for >= 2 grid steps (dual-TC utilization on v7x), capped at TM_MAX.
    half = -(-n // 2)
    return min(TM_MAX, _round_up(half, TM_MIN))


def _snn_kernel(x_ref, wt_ref, o_ref, *, threshold):
    # f32 X tile streamed from HBM; cast to bf16 in VMEM (VPU work hides under DMA),
    # MXU matmul with f32 accumulation, LIF charge folded into the hard threshold.
    x = x_ref[...].astype(jnp.bfloat16)
    y = jnp.dot(x, wt_ref[...], preferred_element_type=jnp.float32)
    o_ref[...] = (y >= threshold).astype(o_ref.dtype)


def snn_forward(x_nchw, w, tau=TAU, v_threshold=V_THRESHOLD, trim=True):
    """x_nchw: (N, 1, 28, 28) float32.  w: (10, 784) (PyTorch Linear layout)."""
    n = x_nchw.shape[0]

    # Free reshape (contiguous bitcast); no pad, no pre-cast of the dominant X stream.
    x_flat = x_nchw.reshape(n, IN_FEATURES)                              # (N, 784) f32

    # W^T, zero-padded only along N to 128 so the output tile is lane-dense (tiny op).
    wt = jnp.transpose(w).astype(jnp.bfloat16)                           # (784, 10)
    wt_p = jnp.pad(wt, ((0, 0), (0, N_PAD - OUT_FEATURES)))              # (784, 128)

    tm = _pick_tm(n)
    grid = (pl.cdiv(n, tm),)  # non-divisible edge blocks are masked by Pallas

    kernel = functools.partial(_snn_kernel, threshold=float(tau * v_threshold))

    out = pl.pallas_call(
        kernel,
        out_shape=jax.ShapeDtypeStruct((n, N_PAD), jnp.bfloat16),
        grid=grid,
        in_specs=[
            pl.BlockSpec((tm, IN_FEATURES), lambda i: (i, 0)),      # X tile, streamed f32
            pl.BlockSpec((IN_FEATURES, N_PAD), lambda i: (0, 0)),   # W^T, resident bf16
        ],
        out_specs=pl.BlockSpec((tm, N_PAD), lambda i: (i, 0)),
        compiler_params=pltpu.CompilerParams(
            dimension_semantics=("parallel",),
            vmem_limit_bytes=32 * 1024 * 1024,   # covers tm=2048 on v5e's 16 MiB default
        ),
        cost_estimate=pl.CostEstimate(
            flops=2 * n * IN_FEATURES * N_PAD,
            bytes_accessed=n * IN_FEATURES * 4 + IN_FEATURES * N_PAD * 2 + n * N_PAD * 2,
            transcendentals=0,
        ),
    )(x_flat, wt_p)

    if not trim:
        # Consumers that accept the padded 128-wide bf16 spike buffer avoid any
        # extra HBM pass entirely.
        return out

    # Single small fused pass: column slice + upcast to f32.
    return out[:, :OUT_FEATURES].astype(jnp.float32)


def snn_forward_ref(x_nchw, w, tau=TAU, v_threshold=V_THRESHOLD):
    """Pure-JAX reference following the same bf16-operand / f32-accum path."""
    n = x_nchw.shape[0]
    x_flat = x_nchw.reshape(n, -1).astype(jnp.bfloat16)
    y = jnp.dot(
        x_flat,
        jnp.transpose(w).astype(jnp.bfloat16),
        preferred_element_type=jnp.float32,
    )
    return (y >= tau * v_threshold).astype(jnp.float32)


if __name__ == "__main__":
    key = jax.random.PRNGKey(0)
    k_x, k_w = jax.random.split(key)

    batch = 2
    # Deterministic synthetic input in NCHW (MNIST-like) and Linear weight (10, 784),
    # kaiming-uniform-style bound 1/sqrt(784) like nn.Linear default init.
    x = jax.random.normal(k_x, (batch, 1, 28, 28), dtype=jnp.float32)
    bound = 1.0 / (IN_FEATURES ** 0.5)
    w = jax.random.uniform(
        k_w, (OUT_FEATURES, IN_FEATURES), minval=-bound, maxval=bound, dtype=jnp.float32
    )

    out = snn_forward(x, w)
    out = jax.block_until_ready(out)

    ref = snn_forward_ref(x, w)
    assert out.shape == (batch, OUT_FEATURES)
    assert jnp.array_equal(out, ref), "Pallas kernel spike mismatch vs JAX reference"

    # TODO(synk): multi-timestep LIF (membrane state carried across T>1) and the ATan
    # surrogate gradient are training/temporal features outside this forward kernel.

    print("KERNEL_OK")
</pallas_src>

<mosaic_0001>
module attributes {stable_mosaic.version = 11 : i64} {
  func.func @_snn_kernel(%arg0: i32, %arg1: memref<16x784xf32, #tpu.memory_space<vmem>>, %arg2: memref<784x128xbf16, #tpu.memory_space<vmem>>, %arg3: memref<16x128xbf16, #tpu.memory_space<vmem>>) attributes {dimension_semantics = [#tpu.dimension_semantics<parallel>], iteration_bounds = array<i64: 1>, scalar_prefetch = 0 : i64, scratch_operands = 0 : i64, tpu.core_type = #tpu.core_type<tc>, window_params = [{transform_indices = @transform_0, window_bounds = array<i64: 16, 784>}, {pipeline_mode = #tpu.pipeline_mode<synchronous>, transform_indices = @transform_1, window_bounds = array<i64: 784, 128>}, {transform_indices = @transform_2, window_bounds = array<i64: 16, 128>}]} {
    %c0 = arith.constant 0 : index
    %c0_0 = arith.constant 0 : index
    %0 = vector.load %arg1[%c0, %c0_0] : memref<16x784xf32, #tpu.memory_space<vmem>>, vector<16x784xf32>
    %1 = arith.truncf %0 : vector<16x784xf32> to vector<16x784xbf16>
    %c0_1 = arith.constant 0 : index
    %c0_2 = arith.constant 0 : index
    %2 = vector.load %arg2[%c0_1, %c0_2] : memref<784x128xbf16, #tpu.memory_space<vmem>>, vector<784x128xbf16>
    %cst = arith.constant dense<0.000000e+00> : vector<16x128xf32>
    %3 = tpu.matmul %1, %2, %cst {dimension_numbers = #tpu.dot_dimension_numbers<[1], [0], [0], [1], [0, 0, 1, 1], [], []>} : vector<16x784xbf16>, vector<784x128xbf16>, vector<16x128xf32> -> vector<16x128xf32>
    %cst_3 = arith.constant 2.000000e+00 : f32
    %4 = vector.broadcast %cst_3 : f32 to vector<16x128xf32>
    %5 = arith.cmpf oge, %3, %4 : vector<16x128xf32>
    %6 = arith.extui %5 : vector<16x128xi1> to vector<16x128xi32>
    %7 = arith.sitofp %6 : vector<16x128xi32> to vector<16x128xf32>
    %8 = arith.truncf %7 : vector<16x128xf32> to vector<16x128xbf16>
    %c0_4 = arith.constant 0 : index
    %c0_5 = arith.constant 0 : index
    %9 = vector.load %arg3[%c0_4, %c0_5] : memref<16x128xbf16, #tpu.memory_space<vmem>>, vector<16x128xbf16>
    tpu.vector_store %arg3[%c0_4, %c0_5], %8 {strides = array<i32>} : memref<16x128xbf16, #tpu.memory_space<vmem>>, vector<16x128xbf16>,
    return
  }
  func.func @transform_0(%arg0: i32) -> (i32, i32) {
    %c0_i32 = arith.constant 0 : i32
    %c0_i32_0 = arith.constant 0 : i32
    return %arg0, %c0_i32 : i32, i32
  }
  func.func @transform_1(%arg0: i32) -> (i32, i32) {
    %c0_i32 = arith.constant 0 : i32
    %c0_i32_0 = arith.constant 0 : i32
    %c0_i32_1 = arith.constant 0 : i32
    return %c0_i32, %c0_i32_0 : i32, i32
  }
  func.func @transform_2(%arg0: i32) -> (i32, i32) {
    %c0_i32 = arith.constant 0 : i32
    %c0_i32_0 = arith.constant 0 : i32
    return %arg0, %c0_i32 : i32, i32
  }
}

</mosaic_0001>

<bundles_post_ra>
// kernel: tpu_custom_call.1
= control target key start
LH: loop header
LB: loop body
LE: loop exit
PB: predicated region body
PF: predicated region fallthrough
CT: control target
= control target key end

     0   :  { %7 = vsyncpa [#allocation3], 0  ;;  %s1233_s0 = inlined_call_operand.hbm [shape: f32[2,784], index: 0, kind: input, shape index: {}]   ;;  %s1234_s1 = inlined_call_operand.hbm [shape: bf16[784,128], index: 1, kind: input, shape index: {}]   ;;  %s1235_s2 = inlined_call_operand.hbm [shape: bf16[2,128], index: 2, kind: output, shape index: {}]  }
   0x1   :  { %8 = vsyncpa [#allocation6], 0 }
   0x2   :  { %9 = vsyncpa [#allocation4], 0 }
   0x3   :  { %14 = vsyncadd [#allocation3], 1568  ;;  %s1170_s9 = smov [#allocation2]  }
   0x4   :  { %s15_s10 = sshll.u32 %s1170_s9, 4  ;;  %s16_s10 = int_to_ptr.vmem [resolvable:$true] %s15_s10 }
   0x5   :  { %s1112_s11 = scalar_lea.vmem %s16_s10, 224  ;;  %s1116_s12 = scalar_lea.vmem %s16_s10, 1792 }
   0x6   :  { %p1113_p0 = scmp.ne.s32.totalorder %s16_s10, %s1112_s11  ;;  %p1117_p1 = scmp.lt.s32.totalorder %s16_s10, %s16_s10 }
   0x7   :  { %p1118_p2 = scmp.lt.s32.totalorder %s1116_s12, %s1112_s11 }
   0x9   :  { %p1119_p3 = por %p1118_p2, %p1117_p1 }
   0xb   :  { %p1120_p4 = pnand %p1119_p3, %p1113_p0 }
   0xd   :  { %1123 = shalt.err (!%p1120_p4)
}
   0xe   :  { %s1171_s13 = smov 224   ;;  %s1172_s14 = smov 14  }
   0xf   :  { %21 = dma.hbm_to_vmem [thread:$0]  %s1233_s0, 224, %s16_s10, [#allocation3], %s1171_s13, %s1171_s13, %s1172_s14  }
  0x10   :  { %s1173_s17 = smov [#allocation5]  }
  0x11   :  { %s27_s18 = sshll.u32 %s1173_s17, 4  ;;  %s28_s18 = int_to_ptr.vmem [resolvable:$true] %s27_s18 }
  0x12   :  { %s1132_s19 = scalar_lea.vmem %s28_s18, 6272  ;;  %p1137_p6 = scmp.lt.s32.totalorder %s28_s18, %s28_s18 }
  0x13   :  { %p1133_p5 = scmp.ne.s32.totalorder %s28_s18, %s1132_s19  ;;  %p1138_p7 = scmp.lt.s32.totalorder %s1132_s19, %s1132_s19 }
  0x15   :  { %p1139_p8 = por %p1138_p7, %p1137_p6 }
  0x17   :  { %p1140_p9 = pnand %p1139_p8, %p1133_p5 }
  0x19   :  { %1143 = shalt.err (!%p1140_p9)
}
  0x1a   :  { %s1174_s20 = smov 64   ;;  %s1175_s21 = smov 4  }
  0x1b   :  { %33 = dma.hbm_to_vmem [thread:$0]  %s1234_s1, 6272, %s28_s18, [#allocation6], %s1174_s20, %s1174_s20, %s1175_s21  }
  0x1c   :  { %1164 = dma.done.wait [#allocation3], 1792  }
  0x1d   :  { %1165 = vsyncadd [#allocation3], 4294965504 }
  0x1e   :  { %1166 = dma.done.wait [#allocation6], 6272  }
  0x1f   :  { %1167 = vsyncadd [#allocation6], 4294961024  ;;  %v1031_v0 = vld [vmem:[#allocation5 + $0x78] sm:$0xff]   ;;  %v1035_v4 = vld [vmem:[#allocation5 + $0x70] sm:$0xff]   ;;  %v1176_v25 = vmov 1983009808   ;;  %v80_v27 = vlaneseq }
  0x20   :  { %v1032_v1 = vld [vmem:[#allocation5 + $0xf8] sm:$0xff]   ;;  %944 = vmatprep.subr.bf16.mxu0 %v1031_v0  ;;  %v1036_v5 = vld [vmem:[#allocation5 + $0xf0] sm:$0xff]   ;;  %v1039_v8 = vld [vmem:[#allocation5 + $0x68] sm:$0xff]   ;;  %v78_v26 = vunpack.c.l.s4 %v1176_v25  ;;  %v1177_v39 = vmov 0.0   ;;  %vm1178_vm0 = vmmov 0   ;;  %vm628_vm1 = vcmask 130048  }
  0x21   :  { %v1033_v2 = vld [vmem:[#allocation5 + $0x38] sm:$0xff]   ;;  %966 = vmatprep.subr.bf16.mxu1 %v1032_v1  ;;  %v1037_v6 = vld [vmem:[#allocation5 + $0x30] sm:$0xff]   ;;  %v1040_v9 = vld [vmem:[#allocation5 + $0xe8] sm:$0xff]   ;;  %v1204_v33 = vshrl.u32 %v80_v27, 7 }
  0x22   :  { %v1034_v3 = vld [vmem:[#allocation5 + $0xb8] sm:$0xff]   ;;  %945 = vmatpush3.bf16.msra.mxu0 %v1033_v2  ;;  %v1038_v7 = vld [vmem:[#allocation5 + $0xb0] sm:$0xff]   ;;  %v1041_v10 = vld [vmem:[#allocation5 + $0x28] sm:$0xff]   ;;  %v79_v32 = vunpack.c.0.s8 %v78_v26 }
  0x23   :  { %967 = vmatpush3.bf16.msra.mxu1 %v1034_v3  ;;  %946 = vmatprep.subr.bf16.mxu0 %v1035_v4  ;;  %v1042_v11 = vld [vmem:[#allocation5 + $0xa8] sm:$0xff]   ;;  %v1043_v12 = vld [vmem:[#allocation5 + $0x60] sm:$0xff]   ;;  %v1047_v16 = vld [vmem:[#allocation5 + $0x58] sm:$0xff]  }
  0x24   :  { %968 = vmatprep.subr.bf16.mxu1 %v1036_v5  ;;  %v1044_v13 = vld [vmem:[#allocation5 + $0xe0] sm:$0xff]   ;;  %v1048_v17 = vld [vmem:[#allocation5 + $0xd8] sm:$0xff]   ;;  %v1051_v20 = vld [vmem:[#allocation5 + $0x50] sm:$0xff]   ;;  %v1207_v37 = vsub.s32 %v79_v32, %v1204_v33 }
  0x25   :  { %v1045_v14 = vld [vmem:[#allocation5 + $0x20] sm:$0xff]   ;;  %v1049_v18 = vld [vmem:[#allocation5 + $0x18] sm:$0xff]   ;;  %v1052_v21 = vld [vmem:[#allocation5 + $0xd0] sm:$0xff]  }
  0x26   :  { %947 = vmatpush3.bf16.msra.mxu0 %v1037_v6  ;;  %v1046_v15 = vld [vmem:[#allocation5 + $0xa0] sm:$0xff]   ;;  %v1050_v19 = vld [vmem:[#allocation5 + $0x98] sm:$0xff]   ;;  %v1053_v22 = vld [vmem:[#allocation5 + $0x10] sm:$0xff]  }
  0x27   :  { %969 = vmatpush3.bf16.msra.mxu1 %v1038_v7  ;;  %948 = vmatprep.subr.bf16.mxu0 %v1039_v8  ;;  %v1054_v23 = vld [vmem:[#allocation5 + $0x90] sm:$0xff]   ;;  %v1055_v24 = vld [vmem:[#allocation5 + $0x48] sm:$0xff]   ;;  %v1059_v31 = vld [vmem:[#allocation5 + $0x40] sm:$0xff]  }
  0x28   :  { %970 = vmatprep.subr.bf16.mxu1 %v1040_v9  ;;  %v1056_v28 = vld [vmem:[#allocation5 + $0xc8] sm:$0xff]   ;;  %v1060_v34 = vld [vmem:[#allocation5 + $0xc0] sm:$0xff]   ;;  %v1075_v54 = vld [vmem:[#allocation5 + $0x178] sm:$0xff]  }
  0x29   :  { %v1057_v29 = vld [vmem:[#allocation5 + $0x8] sm:$0xff]   ;;  %v1061_v35 = vld [vmem:[#allocation5] sm:$0xff]   ;;  %v1076_v1 = vld [vmem:[#allocation5 + $0x138] sm:$0xff]  }
  0x2a   :  { %949 = vmatpush3.bf16.msra.mxu0 %v1041_v10  ;;  %v1058_v30 = vld [vmem:[#allocation5 + $0x88] sm:$0xff]   ;;  %v1062_v36 = vld [vmem:[#allocation5 + $0x80] sm:$0xff]   ;;  %v1077_v3 = vld [vmem:[#allocation5 + $0x170] sm:$0xff]  }
  0x2b   :  { %971 = vmatpush3.bf16.msra.mxu1 %v1042_v11  ;;  %950 = vmatprep.subr.bf16.mxu0 %v1043_v12  ;;  %v1063_v38 = vld [vmem:[#allocation2] ss:$14 sps:$4 sm:$0xff]   ;;  %v1065_v40 = vld [vmem:[#allocation2 + $0x1c] ss:$14 sps:$4 sm:$0xff]   ;;  %v1067_v41 = vld [vmem:[#allocation2 + $0x38] ss:$14 sps:$4 sm:$0xff]  }
  0x2c   :  { %972 = vmatprep.subr.bf16.mxu1 %v1044_v13  ;;  %v1069_v42 = vld [vmem:[#allocation2 + $0x54] ss:$14 sps:$4 sm:$0xff]   ;;  %v83_v43 = vrot.slane %v1063_v38, %v1207_v37  ;;  %v1073_v46 = vld [vmem:[#allocation2 + $0x3c] ss:$14 sps:$4 sm:$0xff]   ;;  %v97_v47 = vrot.slane %v1065_v40, %v1207_v37  ;;  %v154_v48 = vrot.slane %v1067_v41, %v1207_v37  ;;  %v1074_v50 = vld [vmem:[#allocation2 + $0x58] ss:$14 sps:$4 sm:$0xff]  }
  0x2d   :  { %v1071_v44 = vld [vmem:[#allocation2 + $0x4] ss:$14 sps:$4 sm:$0xff]   ;;  %v1072_v45 = vld [vmem:[#allocation2 + $0x20] ss:$14 sps:$4 sm:$0xff]   ;;  %v168_v49 = vrot.slane %v1069_v42, %v1207_v37  ;;  %v161_v53 = vrot.slane %v1073_v46, %v1207_v37  ;;  %v175_v57 = vrot.slane %v1074_v50, %v1207_v37  ;;  %v1079_v7 = vld [vmem:[#allocation5 + $0x168] sm:$0xff]  }
  0x2e   :  { %951 = vmatpush3.bf16.msra.mxu0 %v1045_v14  ;;  %v90_v51 = vrot.slane %v1071_v44, %v1207_v37  ;;  %v104_v52 = vrot.slane %v1072_v45, %v1207_v37  ;;  %v106_v55 = vcombine.high %v83_v43, %v97_v47  ;;  %v105_v58 = vcombine.low %v83_v43, %v97_v47  ;;  %v1078_v6 = vld [vmem:[#allocation5 + $0x130] sm:$0xff]   ;;  %v1080_v8 = vld [vmem:[#allocation5 + $0x128] sm:$0xff]   ;;  %v1081_v9 = vld [vmem:[#allocation5 + $0x160] sm:$0xff]  }
  0x2f   :  { %973 = vmatpush3.bf16.msra.mxu1 %v1046_v15  ;;  %952 = vmatprep.subr.bf16.mxu0 %v1047_v16  ;;  %v177_v56 = vcombine.high %v154_v48, %v168_v49  ;;  %v176_v60 = vcombine.low %v154_v48, %v168_v49  ;;  %v179_v63 = vcombine.high %v161_v53, %v175_v57  ;;  %v1082_v10 = vld [vmem:[#allocation5 + $0x120] sm:$0xff]   ;;  %v1083_v11 = vld [vmem:[#allocation5 + $0x158] sm:$0xff]   ;;  %v1085_v16 = vld [vmem:[#allocation5 + $0x150] sm:$0xff]  }
  0x30   :  { %974 = vmatprep.subr.bf16.mxu1 %v1048_v17  ;;  %v108_v59 = vcombine.high %v90_v51, %v104_v52  ;;  %v107_v61 = vcombine.low %v90_v51, %v104_v52  ;;  %v178_v0 = vcombine.low %v161_v53, %v175_v57  ;;  %v1091_v12 = vld [vmem:[#allocation5 + $0x180] sm:$0xff]   ;;  %v1084_v13 = vld [vmem:[#allocation5 + $0x118] sm:$0xff]   ;;  %v1086_v27 = vld [vmem:[#allocation5 + $0x110] sm:$0xff]  }
  0x31   :  { %v230_v62 = vpack.c.bf16 %v177_v56, %v106_v55  ;;  %v229_v2 = vpack.c.bf16 %v176_v60, %v105_v58  ;;  %v1092_v14 = vld [vmem:[#allocation2 + $0x8] ss:$14 sps:$4 sm:$0xff]   ;;  %v1094_v15 = vld [vmem:[#allocation2 + $0xc] ss:$14 sps:$4 sm:$0x33]  }
  0x32   :  { %953 = vmatpush3.bf16.msra.mxu0 %v1049_v18  ;;  %v232_v4 = vpack.c.bf16 %v179_v63, %v108_v59  ;;  %v231_v5 = vpack.c.bf16 %v178_v0, %v107_v61  ;;  %v1095_v17 = vld [vmem:[#allocation2 + $0x24] ss:$14 sps:$4 sm:$0xff]   ;;  %v1097_v18 = vld [vmem:[#allocation2 + $0x28] ss:$14 sps:$4 sm:$0x33]   ;;  %v1088_v40 = vld [vmem:[#allocation5 + $0x108] sm:$0xff]  }
  0x33   :  { %975 = vmatpush3.bf16.msra.mxu1 %v1050_v19  ;;  %954 = vmatprep.subr.bf16.mxu0 %v1051_v20  ;;  %v119_v19 = vrot.slane %v1092_v14, %v1207_v37  ;;  %v126_v20 = vrot.slane %v1094_v15, %v1207_v37  ;;  %v1101_v25 = vld [vmem:[#allocation2 + $0x5c] ss:$14 sps:$4 sm:$0xff]   ;;  %v1103_v26 = vld [vmem:[#allocation2 + $0x60] ss:$14 sps:$4 sm:$0x33]   ;;  %v1089_v41 = vld [vmem:[#allocation5 + $0x140] sm:$0xff]  }
  0x34   :  { %976 = vmatprep.subr.bf16.mxu1 %v1052_v21  ;;  %664 = vmatprep.mubr.bf16.mxu0 %v230_v62  ;;  %v1098_v21 = vld [vmem:[#allocation2 + $0x40] ss:$14 sps:$4 sm:$0xff]   ;;  %v204_v32 = vrot.slane %v1101_v25, %v1207_v37 }
  0x35   :  { %705 = vmatprep.mubr.bf16.mxu1 %v232_v4  ;;  %v1090_v46 = vld [vmem:[#allocation5 + $0x100] sm:$0xff]  }
  0x36   :  { %955 = vmatpush3.bf16.msra.mxu0 %v1053_v22  ;;  %v1100_v22 = vld [vmem:[#allocation2 + $0x44] ss:$14 sps:$4 sm:$0x33]  }
  0x37   :  { %977 = vmatpush3.bf16.msra.mxu1 %v1054_v23  ;;  %956 = vmatprep.subr.bf16.mxu0 %v1055_v24  ;;  %v133_v23 = vrot.slane %v1095_v17, %v1207_v37  ;;  %v140_v24 = vrot.slane %v1097_v18, %v1207_v37 }
  0x38   :  { %978 = vmatprep.subr.bf16.mxu1 %v1056_v28  ;;  %v190_v28 = vrot.slane %v1098_v21, %v1207_v37 }
  0x39   :  { %v141_v44 = vcombine.low %v119_v19, %v133_v23 }
  0x3a   :  { %957 = vmatpush3.bf16.msra.mxu0 %v1057_v29  ;;  %v197_v29 = vrot.slane %v1100_v22, %v1207_v37  ;;  %v212_v45 = vcombine.low %v190_v28, %v204_v32 }
  0x3b   :  { %979 = vmatpush3.bf16.msra.mxu1 %v1058_v30  ;;  %958 = vmatprep.subr.bf16.mxu0 %v1059_v31  ;;  %v1087_v30 = vld [vmem:[#allocation5 + $0x148] sm:$0xff]   ;;  %v142_v31 = vcombine.high %v119_v19, %v133_v23 }
  0x3c   :  { %980 = vmatprep.subr.bf16.mxu1 %v1060_v34  ;;  %v211_v34 = vrot.slane %v1103_v26, %v1207_v37  ;;  %v233_v47 = vpack.c.bf16 %v212_v45, %v141_v44 }
  0x3e   :  { %959 = vmatpush3.bf16.msra.mxu0 %v1061_v35  ;;  %v143_v35 = vcombine.low %v126_v20, %v140_v24  ;;  %v214_v38 = vcombine.low %v197_v29, %v211_v34 }
  0x3f   :  { %981 = vmatpush3.bf16.msra.mxu1 %v1062_v36  ;;  %988 = vmatprep.subr.bf16.mxu0 %v1075_v54  ;;  %v213_v36 = vcombine.high %v190_v28, %v204_v32 }
  0x40   :  { %1012 = vmatprep.subr.bf16.mxu1 %v1177_v39  ;;  %v235_v43 = vpack.c.bf16 %v214_v38, %v143_v35 }
  0x41   :  { %665 = vmatmul.mubr.bf16.vlgmr.msra.gmra.mxu0 %v229_v2  ;;  %v234_v42 = vpack.c.bf16 %v213_v36, %v142_v31 }
  0x42   :  { %989 = vmatpush3.bf16.msra.mxu0 %v1076_v1  ;;  %706 = vmatmul.mubr.bf16.vlgmr.msra.gmra.mxu1 %v231_v5  ;;  %v1179_v5 = vmov 1966171168  }
  0x43   :  { %990 = vmatprep.subr.bf16.mxu0 %v1077_v3  ;;  %1014 = vmatprep.mubr.msk.bf16.mxu1 %vm1178_vm0, %v1177_v39 }
  0x44   :  { %1013 = vmatpush3.bf16.msra.mxu1 %v1091_v12  ;;  %746 = vmatprep.mubr.bf16.mxu0 %v234_v42 }
  0x46   :  { %991 = vmatpush3.bf16.msra.mxu0 %v1078_v6  ;;  %v806_v6 = vunpack.c.l.s4 %v1179_v5 }
  0x47   :  { %992 = vmatprep.subr.bf16.mxu0 %v1079_v7 }
  0x48   :  { %v807_v12 = vunpack.c.0.s8 %v806_v6 }
  0x4a   :  { %993 = vmatpush3.bf16.msra.mxu0 %v1080_v8  ;;  %1015 = vmatmul.mubr.msk.bf16.vlgmr.msra.gmra.mxu1 %vm628_vm1, %v235_v43  ;;  %v810_v14 = vsub.s32 %v807_v12, %v1204_v33 }
  0x4b   :  { %994 = vmatprep.subr.bf16.mxu0 %v1081_v9 }
  0x4e   :  { %995 = vmatpush3.bf16.msra.mxu0 %v1082_v10 }
  0x4f   :  { %996 = vmatprep.subr.bf16.mxu0 %v1083_v11 }
  0x52   :  { %997 = vmatpush3.bf16.msra.mxu0 %v1084_v13 }
  0x53   :  { %998 = vmatprep.subr.bf16.mxu0 %v1085_v16 }
  0x56   :  { %999 = vmatpush3.bf16.msra.mxu0 %v1086_v27 }
  0x57   :  { %1000 = vmatprep.subr.bf16.mxu0 %v1087_v30 }
  0x5a   :  { %1001 = vmatpush3.bf16.msra.mxu0 %v1088_v40 }
  0x5b   :  { %1002 = vmatprep.subr.bf16.mxu0 %v1089_v41 }
  0x5e   :  { %1003 = vmatpush3.bf16.msra.mxu0 %v1090_v46 }
  0x61   :  { %747 = vmatmul.mubr.bf16.vlgmr.msra.gmra.mxu0 %v233_v47 }
 0x101   :  { %v960_v49 = vpop.f32.mrf.mxu0 }
 0x102   :  { %v982_v37 = vpop.f32.mrf.mxu1 }
 0x103   :  { %v961_v51 = vpop.f32.mrf.mxu0 }
 0x104   :  { %v983_v48 = vpop.f32.mrf.mxu1  ;;  %v962_v59 = vadd.f32 %v961_v51, %v960_v49 }
 0x105   :  { %v963_v54 = vpop.f32.mrf.mxu0  ;;  %v984_v60 = vadd.f32 %v983_v48, %v982_v37 }
 0x106   :  { %v985_v50 = vpop.f32.mrf.mxu1 }
 0x107   :  { %v964_v57 = vpop.f32.mrf.mxu0  ;;  %v708_v63 = vadd.f32 %v984_v60, %v962_v59 }
 0x108   :  { %v986_v52 = vpop.f32.mrf.mxu1  ;;  %v965_v0 = vadd.f32 %v964_v57, %v963_v54 }
 0x109   :  { %v987_v1 = vadd.f32 %v986_v52, %v985_v50 }
 0x10a   :  { %v789_v53 = vpop.f32.mrf.mxu1 }
 0x10b   :  { %v711_v8 = vadd.f32 %v987_v1, %v965_v0 }
 0x10c   :  { %v1016_v55 = vpop.f32.mrf.mxu1 }
 0x10e   :  { %v792_v56 = vpop.f32.mrf.mxu1 }
 0x110   :  { %v1017_v58 = vpop.f32.mrf.mxu1 }
 0x121   :  { %v1004_v61 = vpop.f32.mrf.mxu0 }
 0x123   :  { %v1005_v62 = vpop.f32.mrf.mxu0 }
 0x124   :  { %v1006_v2 = vadd.f32 %v1005_v62, %v1004_v61 }
 0x125   :  { %v1007_v3 = vpop.f32.mrf.mxu0 }
 0x126   :  { %v749_v4 = vadd.f32 %v1006_v2, %v708_v63 }
 0x127   :  { %v1008_v7 = vpop.f32.mrf.mxu0 }
 0x128   :  { %v790_v9 = vadd.f32 %v789_v53, %v749_v4  ;;  %v1009_v10 = vadd.f32 %v1008_v7, %v1007_v3 }
 0x12a   :  { %v752_v11 = vadd.f32 %v1009_v10, %v711_v8  ;;  %vm796_vm2 = vcmp.ge.f32.partialorder %v790_v9, 2.0 }
 0x12b   :  { %v937_v15 = vsel %vm796_vm2, 1.0, %v1177_v39 }
 0x12c   :  { %v793_v13 = vadd.f32 %v792_v56, %v752_v11 }
 0x12e   :  { %vm797_vm3 = vcmp.ge.f32.partialorder %v793_v13, 2.0 }
 0x12f   :  { %v938_v16 = vsel %vm797_vm3, 1.0, %v1177_v39 }
 0x130   :  { %v802_v17 = vpack.c.bf16 %v938_v16, %v937_v15  ;;  %v939_v18 = vpack.c.bf16 %v938_v16, %v938_v16 }
 0x132   :  { %v811_v19 = vrot.slane %v802_v17, %v810_v14  ;;  %v818_v20 = vrot.slane %v939_v18, %v810_v14 }
 0x134   :  { %v819_v21 = vcombine.high %v811_v19, %v811_v19  ;;  %v820_v22 = vcombine.high %v818_v20, %v818_v20  ;;  %v827_v23 = vrot.slane %v811_v19, %v810_v14  ;;  %v834_v24 = vrot.slane %v818_v20, %v810_v14  ;;  %940 = vst.sshfl [vmem:[#allocation7] sm:$0x1 pattern:$0x73625140] %v811_v19 }
 0x135   :  { %942 = vst.sshfl [vmem:[#allocation7 + $0x4] sm:$0x1 pattern:$0x73625140] %v818_v20 }
 0x136   :  { %v841_v25 = vrot.slane %v819_v21, %v810_v14  ;;  %v848_v26 = vrot.slane %v820_v22, %v810_v14  ;;  %v849_v27 = vcombine.high %v827_v23, %v827_v23  ;;  %v850_v28 = vcombine.high %v834_v24, %v834_v24  ;;  %941 = vst.sshfl [vmem:[#allocation7 + $0x1] sm:$0x1 pattern:$0x73625140] %v819_v21 }
 0x137   :  { %943 = vst.sshfl [vmem:[#allocation7 + $0x5] sm:$0x1 pattern:$0x73625140] %v820_v22 }
 0x138   :  { %v851_v33 = vcombine.high %v841_v25, %v841_v25  ;;  %v852_v29 = vcombine.high %v848_v26, %v848_v26  ;;  %863 = vst [vmem:[#allocation7 + $0x2] sm:$0x1] %v849_v27  ;;  %867 = vst [vmem:[#allocation7 + $0x6] sm:$0x1] %v850_v28 }
 0x13a   :  { %864 = vst [vmem:[#allocation7 + $0x3] sm:$0x1] %v851_v33  ;;  %868 = vst [vmem:[#allocation7 + $0x7] sm:$0x1] %v852_v29 }
 0x13b   :  { %873 = vsyncadd [#allocation4], 112  ;;  %s1180_s0 = smov [#allocation7]  }
 0x13c   :  { %s874_s1 = sshll.u32 %s1180_s0, 4  ;;  %s875_s1 = int_to_ptr.vmem [resolvable:$true] %s874_s1 }
 0x13d   :  { %s1144_s24 = scalar_lea.vmem %s875_s1, 16  ;;  %s1148_s25 = scalar_lea.vmem %s875_s1, 128 }
 0x13e   :  { %p1145_p10 = scmp.ne.s32.totalorder %s875_s1, %s1144_s24  ;;  %p1149_p11 = scmp.lt.s32.totalorder %s875_s1, %s875_s1 }
 0x13f   :  { %p1150_p12 = scmp.lt.s32.totalorder %s1148_s25, %s1144_s24 }
 0x141   :  { %p1151_p13 = por %p1150_p12, %p1149_p11 }
 0x143   :  { %p1152_p0 = pnand %p1151_p13, %p1145_p10 }
 0x145   :  { %1155 = shalt.err (!%p1152_p0)
}
 0x146   :  { %s1181_s26 = smov 16   ;;  %s1182_s27 = smov 1  }
 0x147   :  { %880 = dma.vmem_to_hbm [thread:$0]  %s875_s1, 16, %s1235_s2, [#allocation4], %s1181_s26, %s1181_s26, %s1182_s27  }
 0x148   :  { %1168 = dma.done.wait [#allocation4], 128  }
 0x149   :  { %1169 = vsyncadd [#allocation4], 4294967168 }
 0x14a   :  { %884 = vsyncpa [#allocation3], 1 }
 0x14b   :  { %885 = vsyncpa [#allocation6], 1 }
 0x14c   :  { %886 = vsyncpa [#allocation4], 1 }

</bundles_post_ra>
